<compile_context>
chip_gen: v7x
topology: tpu7x:2x2x1
jax: 0.10.0
libtpu: 0.0.40
codegen_flags: <defaults>
</compile_context>

<pallas_src>
import functools

import jax
import jax.numpy as jnp
from jax.experimental import pallas as pl
from jax.experimental.pallas import tpu as pltpu


N_CLASSES = 3
ALPHA = 2
LANES = 128


def _round_up(x, m):
    return ((x + m - 1) // m) * m


def _cdw_loss_kernel(logits_ref, gt_ref, out_ref, *, n_classes, alpha, batch, rows_blk):
    # logits_ref: (C, rows_blk, 128) f32 ; gt_ref: (rows_blk, 128) i32
    # out_ref:    (1, 128) f32 per-block partial sum (lane vector).
    pid = pl.program_id(0)

    y = gt_ref[...]                                        # (rows, 128) i32

    # Per-class planes are dense (rows, 128) vregs; class reduction is plain VPU.
    xs = [logits_ref[k] for k in range(n_classes)]

    m = xs[0]
    for k in range(1, n_classes):
        m = jnp.maximum(m, xs[k])
    es = [jnp.exp(x - m) for x in xs]                      # EUP
    denom = es[0]
    for k in range(1, n_classes):
        denom = denom + es[k]
    log_denom = jnp.log(denom)                             # EUP

    # Validity mask: global sample index < batch.  Covers both the 128-lane padding
    # done in the wrapper and any ragged last grid block (garbage is discarded by the
    # select below, including NaN/Inf).
    row = jax.lax.broadcasted_iota(jnp.int32, y.shape, dimension=0)
    lane = jax.lax.broadcasted_iota(jnp.int32, y.shape, dimension=1)
    idx = (pid * rows_blk + row) * LANES + lane
    valid = idx < batch

    acc = jnp.zeros_like(m)
    for k in range(n_classes):
        # log(1 - s_k) = log(denom - e_k) - log(denom): no divide, no materialized
        # softmax, no 1 - s cancellation.
        log_part = jnp.log(denom - es[k]) - log_denom      # EUP
        dist_i = jnp.abs(y - k)                            # (rows, 128) i32
        dist = dist_i.astype(jnp.float32)
        w = dist
        for _ in range(alpha - 1):                         # static alpha -> VPU muls
            w = w * dist
        # One fused select: drops padded/ragged samples AND guards the true class
        # (w == 0) against (-inf) * 0 when s_k saturates.
        acc = acc + jnp.where(valid & (dist_i != 0), log_part * w, 0.0)

    # Sublane-only reduce; the cheap cross-lane + cross-block reduce happens outside.
    out_ref[...] = jnp.sum(acc, axis=0, keepdims=True)     # (1, 128)


def cdw_loss(model_output, ground_truth, *, n_classes=N_CLASSES, alpha=ALPHA,
             block_rows=512):
    """model_output: (B, C) float32 logits; ground_truth: (B,) int labels."""
    b, c = model_output.shape
    assert c == n_classes, (c, n_classes)

    # Repack once (XLA fuses cast + transpose + pad + reshape into a single copy):
    # classes -> leading planes, batch -> dense (rows, 128) sublane x lane tiles.
    b_pad = _round_up(b, 8 * LANES)            # rows become a multiple of 8
    r = b_pad // LANES
    x = model_output.astype(jnp.float32).T                       # (C, B)
    x = jnp.pad(x, ((0, 0), (0, b_pad - b)))
    logits_crl = x.reshape(n_classes, r, LANES)
    gt_rl = jnp.pad(ground_truth.astype(jnp.int32), (0, b_pad - b)).reshape(r, LANES)

    rows_blk = min(_round_up(block_rows, 8), r)             # mult of 8, <= full extent
    num_blocks = pl.cdiv(r, rows_blk)                       # ragged last block OK

    kernel = functools.partial(
        _cdw_loss_kernel, n_classes=n_classes, alpha=alpha, batch=b, rows_blk=rows_blk)

    cost = pl.CostEstimate(
        flops=b_pad * n_classes * 12,
        transcendentals=b_pad * (2 * n_classes + 1),
        bytes_accessed=b_pad * (n_classes * 4 + 4) + num_blocks * LANES * 4,
    )

    partials = pl.pallas_call(
        kernel,
        out_shape=jax.ShapeDtypeStruct((num_blocks, LANES), jnp.float32),
        grid=(num_blocks,),
        in_specs=[
            pl.BlockSpec((n_classes, rows_blk, LANES), lambda i: (0, i, 0)),
            pl.BlockSpec((rows_blk, LANES), lambda i: (i, 0)),
        ],
        out_specs=pl.BlockSpec((1, LANES), lambda i: (i, 0)),
        compiler_params=pltpu.CompilerParams(
            dimension_semantics=("parallel",),   # independent per-block partials
        ),
        cost_estimate=cost,
    )(logits_crl, gt_rl)

    total = jnp.sum(partials)
    # -mean(batch_loss) / 4  ==  -(total / C) / 4
    return -(total / jnp.float32(n_classes)) * jnp.float32(0.25)


def _reference(model_output, ground_truth):
    # Pure-JAX reference of the PyTorch forward, for a correctness check.
    s = jax.nn.softmax(model_output, axis=1)
    log_part = jnp.log(1.0 - s)
    k = jnp.arange(model_output.shape[1])[None, :]
    w = jnp.abs(k - ground_truth[:, None]).astype(jnp.float32) ** ALPHA
    batch_loss = jnp.sum(log_part * w, axis=0)
    return -jnp.mean(batch_loss) / 4.0


if __name__ == "__main__":
    key = jax.random.PRNGKey(0)

    # Small shape matching the module's example: batch=4, n_classes=3.
    batch = 4
    model_output = jax.random.normal(key, (batch, N_CLASSES), dtype=jnp.float32)
    ground_truth = jnp.array([2, 0, 1, 2], dtype=jnp.int32)

    loss = jax.block_until_ready(cdw_loss(model_output, ground_truth))
    ref = _reference(model_output, ground_truth)
    assert jnp.allclose(loss, ref, rtol=1e-5, atol=1e-5), (loss, ref)

    # Exercise the multi-block grid, per-block partial sums and the padding mask.
    k1, k2 = jax.random.split(key)
    batch2 = 1500
    logits2 = jax.random.normal(k1, (batch2, N_CLASSES), dtype=jnp.float32)
    labels2 = jax.random.randint(k2, (batch2,), 0, N_CLASSES, dtype=jnp.int32)
    loss2 = jax.block_until_ready(cdw_loss(logits2, labels2, block_rows=8))
    ref2 = _reference(logits2, labels2)
    assert jnp.allclose(loss2, ref2, rtol=1e-4, atol=1e-4), (loss2, ref2)

    print("KERNEL_OK")
</pallas_src>

<mosaic_0001>
module attributes {stable_mosaic.version = 11 : i64} {
  func.func @_cdw_loss_kernel(%arg0: i32, %arg1: memref<3x8x128xf32, #tpu.memory_space<vmem>>, %arg2: memref<8x128xi32, #tpu.memory_space<vmem>>, %arg3: memref<1x128xf32, #tpu.memory_space<vmem>>) attributes {dimension_semantics = [#tpu.dimension_semantics<parallel>], iteration_bounds = array<i64: 1>, scalar_prefetch = 0 : i64, scratch_operands = 0 : i64, tpu.core_type = #tpu.core_type<tc>, window_params = [{transform_indices = @transform_0, window_bounds = array<i64: 3, 8, 128>}, {transform_indices = @transform_1, window_bounds = array<i64: 8, 128>}, {transform_indices = @transform_2, window_bounds = array<i64: 1, 128>}]} {
    %c0 = arith.constant 0 : index
    %c0_0 = arith.constant 0 : index
    %0 = vector.load %arg2[%c0, %c0_0] : memref<8x128xi32, #tpu.memory_space<vmem>>, vector<8x128xi32>
    %c0_1 = arith.constant 0 : index
    %c0_2 = arith.constant 0 : index
    %c0_3 = arith.constant 0 : index
    %1 = vector.load %arg1[%c0_1, %c0_2, %c0_3] : memref<3x8x128xf32, #tpu.memory_space<vmem>>, vector<1x8x128xf32>
    %2 = vector.shape_cast %1 : vector<1x8x128xf32> to vector<8x128xf32>
    %c1 = arith.constant 1 : index
    %c0_4 = arith.constant 0 : index
    %c0_5 = arith.constant 0 : index
    %3 = vector.load %arg1[%c1, %c0_4, %c0_5] : memref<3x8x128xf32, #tpu.memory_space<vmem>>, vector<1x8x128xf32>
    %4 = vector.shape_cast %3 : vector<1x8x128xf32> to vector<8x128xf32>
    %c2 = arith.constant 2 : index
    %c0_6 = arith.constant 0 : index
    %c0_7 = arith.constant 0 : index
    %5 = vector.load %arg1[%c2, %c0_6, %c0_7] : memref<3x8x128xf32, #tpu.memory_space<vmem>>, vector<1x8x128xf32>
    %6 = vector.shape_cast %5 : vector<1x8x128xf32> to vector<8x128xf32>
    %7 = arith.maximumf %2, %4 : vector<8x128xf32>
    %8 = arith.maximumf %7, %6 : vector<8x128xf32>
    %9 = arith.subf %2, %8 : vector<8x128xf32>
    %10 = math.exp %9 : vector<8x128xf32>
    %11 = arith.subf %4, %8 : vector<8x128xf32>
    %12 = math.exp %11 : vector<8x128xf32>
    %13 = arith.subf %6, %8 : vector<8x128xf32>
    %14 = math.exp %13 : vector<8x128xf32>
    %15 = arith.addf %10, %12 : vector<8x128xf32>
    %16 = arith.addf %15, %14 : vector<8x128xf32>
    %17 = math.log %16 : vector<8x128xf32>
    %18 = tpu.iota {dimensions = array<i32: 0>} : vector<8x128xi32>
    %19 = tpu.iota {dimensions = array<i32: 1>} : vector<8x128xi32>
    %c8_i32 = arith.constant 8 : i32
    %20 = arith.muli %arg0, %c8_i32 : i32
    %21 = vector.broadcast %20 : i32 to vector<8x128xi32>
    %22 = arith.addi %21, %18 : vector<8x128xi32>
    %c128_i32 = arith.constant 128 : i32
    %23 = vector.broadcast %c128_i32 : i32 to vector<8x128xi32>
    %24 = arith.muli %22, %23 : vector<8x128xi32>
    %25 = arith.addi %24, %19 : vector<8x128xi32>
    %c4_i32 = arith.constant 4 : i32
    %26 = vector.broadcast %c4_i32 : i32 to vector<8x128xi32>
    %27 = arith.cmpi slt, %25, %26 : vector<8x128xi32>
    %cst = arith.constant 0.000000e+00 : f32
    %28 = vector.broadcast %cst : f32 to vector<8x128xf32>
    %29 = arith.subf %16, %10 : vector<8x128xf32>
    %30 = math.log %29 : vector<8x128xf32>
    %31 = arith.subf %30, %17 : vector<8x128xf32>
    %c0_i32 = arith.constant 0 : i32
    %32 = vector.broadcast %c0_i32 : i32 to vector<8x128xi32>
    %33 = arith.subi %0, %32 : vector<8x128xi32>
    %34 = math.absi %33 : vector<8x128xi32>
    %35 = arith.sitofp %34 : vector<8x128xi32> to vector<8x128xf32>
    %36 = arith.mulf %35, %35 : vector<8x128xf32>
    %c0_i32_8 = arith.constant 0 : i32
    %37 = vector.broadcast %c0_i32_8 : i32 to vector<8x128xi32>
    %38 = arith.cmpi ne, %34, %37 : vector<8x128xi32>
    %39 = arith.andi %27, %38 : vector<8x128xi1>
    %40 = arith.mulf %31, %36 : vector<8x128xf32>
    %cst_9 = arith.constant 0.000000e+00 : f32
    %41 = vector.broadcast %cst_9 : f32 to vector<8x128xf32>
    %42 = arith.select %39, %40, %41 : vector<8x128xi1>, vector<8x128xf32>
    %43 = arith.addf %28, %42 : vector<8x128xf32>
    %44 = arith.subf %16, %12 : vector<8x128xf32>
    %45 = math.log %44 : vector<8x128xf32>
    %46 = arith.subf %45, %17 : vector<8x128xf32>
    %c1_i32 = arith.constant 1 : i32
    %47 = vector.broadcast %c1_i32 : i32 to vector<8x128xi32>
    %48 = arith.subi %0, %47 : vector<8x128xi32>
    %49 = math.absi %48 : vector<8x128xi32>
    %50 = arith.sitofp %49 : vector<8x128xi32> to vector<8x128xf32>
    %51 = arith.mulf %50, %50 : vector<8x128xf32>
    %c0_i32_10 = arith.constant 0 : i32
    %52 = vector.broadcast %c0_i32_10 : i32 to vector<8x128xi32>
    %53 = arith.cmpi ne, %49, %52 : vector<8x128xi32>
    %54 = arith.andi %27, %53 : vector<8x128xi1>
    %55 = arith.mulf %46, %51 : vector<8x128xf32>
    %cst_11 = arith.constant 0.000000e+00 : f32
    %56 = vector.broadcast %cst_11 : f32 to vector<8x128xf32>
    %57 = arith.select %54, %55, %56 : vector<8x128xi1>, vector<8x128xf32>
    %58 = arith.addf %43, %57 : vector<8x128xf32>
    %59 = arith.subf %16, %14 : vector<8x128xf32>
    %60 = math.log %59 : vector<8x128xf32>
    %61 = arith.subf %60, %17 : vector<8x128xf32>
    %c2_i32 = arith.constant 2 : i32
    %62 = vector.broadcast %c2_i32 : i32 to vector<8x128xi32>
    %63 = arith.subi %0, %62 : vector<8x128xi32>
    %64 = math.absi %63 : vector<8x128xi32>
    %65 = arith.sitofp %64 : vector<8x128xi32> to vector<8x128xf32>
    %66 = arith.mulf %65, %65 : vector<8x128xf32>
    %c0_i32_12 = arith.constant 0 : i32
    %67 = vector.broadcast %c0_i32_12 : i32 to vector<8x128xi32>
    %68 = arith.cmpi ne, %64, %67 : vector<8x128xi32>
    %69 = arith.andi %27, %68 : vector<8x128xi1>
    %70 = arith.mulf %61, %66 : vector<8x128xf32>
    %cst_13 = arith.constant 0.000000e+00 : f32
    %71 = vector.broadcast %cst_13 : f32 to vector<8x128xf32>
    %72 = arith.select %69, %70, %71 : vector<8x128xi1>, vector<8x128xf32>
    %73 = arith.addf %58, %72 : vector<8x128xf32>
    %cst_14 = arith.constant dense<0.000000e+00> : vector<128xf32>
    %74 = vector.multi_reduction <add>, %73, %cst_14 [0] : vector<8x128xf32> to vector<128xf32>
    %75 = vector.shape_cast %74 : vector<128xf32> to vector<1x128xf32>
    %c0_15 = arith.constant 0 : index
    %c0_16 = arith.constant 0 : index
    %76 = vector.load %arg3[%c0_15, %c0_16] : memref<1x128xf32, #tpu.memory_space<vmem>>, vector<1x128xf32>
    tpu.vector_store %arg3[%c0_15, %c0_16], %75 {strides = array<i32>} : memref<1x128xf32, #tpu.memory_space<vmem>>, vector<1x128xf32>,
    return
  }
  func.func @transform_0(%arg0: i32) -> (i32, i32, i32) {
    %c0_i32 = arith.constant 0 : i32
    %c0_i32_0 = arith.constant 0 : i32
    %c0_i32_1 = arith.constant 0 : i32
    return %c0_i32, %arg0, %c0_i32_0 : i32, i32, i32
  }
  func.func @transform_1(%arg0: i32) -> (i32, i32) {
    %c0_i32 = arith.constant 0 : i32
    %c0_i32_0 = arith.constant 0 : i32
    return %arg0, %c0_i32 : i32, i32
  }
  func.func @transform_2(%arg0: i32) -> (i32, i32) {
    %c0_i32 = arith.constant 0 : i32
    %c0_i32_0 = arith.constant 0 : i32
    return %arg0, %c0_i32 : i32, i32
  }
}

</mosaic_0001>

<bundles_post_ra>
// kernel: tpu_custom_call.1
= control target key start
LH: loop header
LB: loop body
LE: loop exit
PB: predicated region body
PF: predicated region fallthrough
CT: control target
= control target key end

     0   :  { %7 = vsyncpa [#allocation3], 0  ;;  %s291_s0 = inlined_call_operand.hbm [shape: f32[3,8,128], index: 0, kind: input, shape index: {}]   ;;  %s292_s1 = inlined_call_operand.hbm [shape: s32[8,128], index: 1, kind: input, shape index: {}]   ;;  %s293_s2 = inlined_call_operand.hbm [shape: f32[1,128], index: 2, kind: output, shape index: {}]  }
   0x1   :  { %8 = vsyncpa [#allocation6], 0 }
   0x2   :  { %9 = vsyncpa [#allocation4], 0  ;;  %s232_s9 = smov [#allocation2]   ;;  %s160_s13 = scalar_lea.hbm %s291_s0, 384 }
   0x3   :  { %s15_s10 = sshll.u32 %s232_s9, 4  ;;  %p161_p0 = scmp.ne.s32.totalorder %s291_s0, %s160_s13  ;;  %s16_s10 = int_to_ptr.vmem [resolvable:$true] %s15_s10 }
   0x4   :  { %p164_p1 = scmp.lt.u32.totalorder %s160_s13, %s291_s0 }
   0x6   :  { %p166_p2 = pnand %p164_p1, %p161_p0 }
   0x8   :  { %169 = shalt.err (!%p166_p2)
}
   0x9   :  { %s170_s18 = scalar_lea.vmem %s16_s10, 384  ;;  %p175_p4 = scmp.lt.s32.totalorder %s16_s10, %s16_s10 }
   0xa   :  { %p171_p3 = scmp.ne.s32.totalorder %s16_s10, %s170_s18  ;;  %p176_p5 = scmp.lt.s32.totalorder %s170_s18, %s170_s18 }
   0xc   :  { %p177_p6 = por %p176_p5, %p175_p4 }
   0xe   :  { %p178_p7 = pnand %p177_p6, %p171_p3 }
  0x10   :  { %181 = shalt.err (!%p178_p7)
}
  0x11   :  { %s233_s19 = smov 128   ;;  %s234_s20 = smov 8  }
  0x12   :  { %21 = dma.hbm_to_vmem [thread:$0]  %s291_s0, 384, %s16_s10, [#allocation3], %s233_s19, %s233_s19, %s234_s20  }
  0x13   :  { %s235_s23 = smov [#allocation5]   ;;  %s182_s27 = scalar_lea.hbm %s292_s1, 128 }
  0x14   :  { %s28_s24 = sshll.u32 %s235_s23, 4  ;;  %p183_p8 = scmp.ne.s32.totalorder %s292_s1, %s182_s27  ;;  %s29_s24 = int_to_ptr.vmem [resolvable:$true] %s28_s24 }
  0x15   :  { %p186_p9 = scmp.lt.u32.totalorder %s182_s27, %s292_s1 }
  0x17   :  { %p188_p10 = pnand %p186_p9, %p183_p8 }
  0x19   :  { %191 = shalt.err (!%p188_p10)
}
  0x1a   :  { %s192_s4 = scalar_lea.vmem %s29_s24, 128  ;;  %p197_p12 = scmp.lt.s32.totalorder %s29_s24, %s29_s24 }
  0x1b   :  { %p193_p11 = scmp.ne.s32.totalorder %s29_s24, %s192_s4  ;;  %p198_p13 = scmp.lt.s32.totalorder %s192_s4, %s192_s4 }
  0x1d   :  { %p199_p0 = por %p198_p13, %p197_p12 }
  0x1f   :  { %p200_p1 = pnand %p199_p0, %p193_p11 }
  0x21   :  { %203 = shalt.err (!%p200_p1)
}
  0x22   :  { %31 = dma.hbm_to_vmem [thread:$0]  %s292_s1, 128, %s29_s24, [#allocation6]  }
  0x23   :  { %226 = dma.done.wait [#allocation3], 384  }
  0x24   :  { %227 = vsyncadd [#allocation3], 4294966912 }
  0x25   :  { %228 = dma.done.wait [#allocation6], 128  }
  0x26   :  { %229 = vsyncadd [#allocation6], 4294967168  ;;  %v39_v0 = vld [vmem:[#allocation2] sm:$0xff]  ;;  %v41_v1 = vld [vmem:[#allocation2 + $0x8] sm:$0xff]  ;;  %v59_v16 = vlaneseq  ;;  %s236_s1 = smov [#allocation7]  }
  0x27   :  { %v43_v2 = vld [vmem:[#allocation2 + $0x10] sm:$0xff]  ;;  %v44_v3 = vmax.f32 %v39_v0, %v41_v1  ;;  %v38_v13 = vld [vmem:[#allocation5] sm:$0xff]  ;;  %s126_s6 = sshll.u32 %s236_s1, 4  ;;  %s127_s6 = int_to_ptr.vmem [resolvable:$true] %s126_s6 }
  0x28   :  { %v137_v18 = vadd.s32 4294967295, %v38_v13  ;;  %v139_v19 = vadd.s32 4294967294, %v38_v13  ;;  %v60_v23 = vshrl.u32 %v59_v16, 7  ;;  %v74_v24 = vsub.s32 0, %v38_v13  ;;  %s204_s7 = scalar_lea.vmem %s127_s6, 16  ;;  %s208_s8 = scalar_lea.vmem %s127_s6, 32 }
  0x29   :  { %v45_v4 = vmax.f32 %v44_v3, %v43_v2  ;;  %v62_v27 = vand.u32 127, %v59_v16  ;;  %p205_p2 = scmp.ne.s32.totalorder %s127_s6, %s204_s7  ;;  %p209_p3 = scmp.lt.s32.totalorder %s127_s6, %s127_s6 }
  0x2a   :  { %v89_v25 = vsub.s32 0, %v137_v18  ;;  %v104_v26 = vsub.s32 0, %v139_v19  ;;  %v66_v28 = vmul.u32 128, %v60_v23  ;;  %v136_v29 = vmin.u32 %v74_v24, %v38_v13  ;;  %p210_p4 = scmp.lt.s32.totalorder %s208_s8, %s204_s7 }
  0x2b   :  { %v46_v5 = vsub.f32 %v39_v0, %v45_v4  ;;  %v49_v6 = vsub.f32 %v41_v1, %v45_v4  ;;  %v52_v7 = vsub.f32 %v43_v2, %v45_v4 }
  0x2c   :  { %v138_v30 = vmin.u32 %v137_v18, %v89_v25  ;;  %v140_v31 = vmin.u32 %v139_v19, %v104_v26  ;;  %v67_v32 = vadd.s32 %v66_v28, %v62_v27  ;;  %v76_v33 = vcvt.s32.f32 %v136_v29  ;;  %p211_p5 = por %p210_p4, %p209_p3 }
  0x2d   :  { %v47_v8 = vmul.f32 1.442695, %v46_v5  ;;  %v50_v9 = vmul.f32 1.442695, %v49_v6  ;;  %v53_v10 = vmul.f32 1.442695, %v52_v7 }
  0x2e   :  { %v91_v35 = vcvt.s32.f32 %v138_v30  ;;  %v106_v37 = vcvt.s32.f32 %v140_v31  ;;  %vm68_vm0 = vcmp.lt.s32.totalorder %v67_v32, 4  ;;  %v77_v41 = vmul.f32 %v76_v33, %v76_v33  ;;  %p212_p6 = pnand %p211_p5, %p205_p2 }
  0x2f   :  { %146 = vpow2.f32 %v47_v8  ;;  %vm78_vm1 = vcmp.ne.s32.totalorder %v136_v29, 0  ;;  %vm93_vm2 = vcmp.ne.s32.totalorder %v138_v30, 0  ;;  %vm108_vm3 = vcmp.ne.s32.totalorder %v140_v31, 0 }
  0x30   :  { %148 = vpow2.f32 %v50_v9  ;;  %v92_v44 = vmul.f32 %v91_v35, %v91_v35  ;;  %v107_v47 = vmul.f32 %v106_v37, %v106_v37  ;;  %vm79_vm4 = vmand %vm68_vm0, %vm78_vm1 }
  0x31   :  { %150 = vpow2.f32 %v53_v10  ;;  %vm94_vm5 = vmand %vm68_vm0, %vm93_vm2 }
  0x32   :  { %vm109_vm6 = vmand %vm68_vm0, %vm108_vm3 }
  0x39   :  { %v147_v11 = vpop.eup %146 }
  0x3a   :  { %v149_v12 = vpop.eup %148 }
  0x3b   :  { %v151_v14 = vpop.eup %150  ;;  %v55_v15 = vadd.f32 %v149_v12, %v147_v11 }
  0x3d   :  { %v56_v17 = vadd.f32 %v151_v14, %v55_v15 }
  0x3f   :  { %152 = vlog2.f32 %v56_v17  ;;  %v69_v20 = vsub.f32 %v56_v17, %v147_v11  ;;  %v83_v21 = vsub.f32 %v56_v17, %v149_v12  ;;  %v98_v22 = vsub.f32 %v56_v17, %v151_v14 }
  0x41   :  { %154 = vlog2.f32 %v69_v20 }
  0x42   :  { %156 = vlog2.f32 %v83_v21 }
  0x43   :  { %158 = vlog2.f32 %v98_v22 }
  0x49   :  { %v153_v34 = vpop.eup %152 }
  0x4a   :  { %v58_v36 = vmul.f32 0.6931472, %v153_v34 }
  0x4b   :  { %v155_v38 = vpop.eup %154 }
  0x4c   :  { %v157_v39 = vpop.eup %156  ;;  %v71_v40 = vmul.f32 0.6931472, %v155_v38 }
  0x4d   :  { %v159_v42 = vpop.eup %158  ;;  %v85_v43 = vmul.f32 0.6931472, %v157_v39 }
  0x4e   :  { %v72_v45 = vsub.f32 %v71_v40, %v58_v36  ;;  %v100_v46 = vmul.f32 0.6931472, %v159_v42 }
  0x4f   :  { %v86_v48 = vsub.f32 %v85_v43, %v58_v36 }
  0x50   :  { %v80_v49 = vmul.f32 %v77_v41, %v72_v45  ;;  %v101_v50 = vsub.f32 %v100_v46, %v58_v36 }
  0x51   :  { %v95_v51 = vmul.f32 %v92_v44, %v86_v48 }
  0x52   :  { %v81_v52 = vsel %vm79_vm4, %v80_v49, 0.0  ;;  %v110_v53 = vmul.f32 %v107_v47, %v101_v50 }
  0x53   :  { %v96_v54 = vsel %vm94_vm5, %v95_v51, 0.0 }
  0x54   :  { %v97_v55 = vadd.f32 %v96_v54, %v81_v52  ;;  %v111_v56 = vsel %vm109_vm6, %v110_v53, 0.0 }
  0x56   :  { %v112_v57 = vadd.f32 %v111_v56, %v97_v55 }
  0x58   :  { %v113_v58 = vrot.slane %v112_v57, 4 }
  0x5a   :  { %v114_v59 = vadd.f32 %v113_v58, %v112_v57 }
  0x5c   :  { %v115_v60 = vrot.slane %v114_v59, 2 }
  0x5e   :  { %v116_v61 = vadd.f32 %v115_v60, %v114_v59 }
  0x60   :  { %v117_v62 = vrot.slane %v116_v61, 1 }
  0x62   :  { %v118_v63 = vadd.f32 %v117_v62, %v116_v61 }
  0x64   :  { %119 = vst [vmem:[#allocation7] sm:$0x1] %v118_v63 }
  0x65   :  { %215 = shalt.err (!%p212_p6)
}
  0x66   :  { %s216_s11 = scalar_lea.hbm %s293_s2, 16 }
  0x67   :  { %p217_p7 = scmp.ne.s32.totalorder %s293_s2, %s216_s11  ;;  %p220_p8 = scmp.lt.u32.totalorder %s216_s11, %s293_s2 }
  0x69   :  { %p222_p9 = pnand %p220_p8, %p217_p7 }
  0x6b   :  { %225 = shalt.err (!%p222_p9)
}
  0x6c   :  { %129 = dma.vmem_to_hbm [thread:$0]  %s127_s6, 16, %s293_s2, [#allocation4]  }
  0x6d   :  { %230 = dma.done.wait [#allocation4], 16  }
  0x6e   :  { %231 = vsyncadd [#allocation4], 4294967280 }
  0x6f   :  { %133 = vsyncpa [#allocation3], 1 }
  0x70   :  { %134 = vsyncpa [#allocation6], 1 }
  0x71   :  { %135 = vsyncpa [#allocation4], 1 }

</bundles_post_ra>
